<compile_context>
chip_gen: v7x
topology: tpu7x:2x2x1
jax: 0.10.0
libtpu: 0.0.40
codegen_flags: <defaults>
</compile_context>

<pallas_src>
import functools

import jax
import jax.numpy as jnp
import numpy as np
from jax.experimental import pallas as pl
from jax.experimental.pallas import tpu as pltpu


def _bilinear_matrix(in_size: int, out_size: int, align_corners: bool) -> np.ndarray:
    """(out_size, in_size) interpolation matrix matching F.interpolate(mode='bilinear')."""
    dst = np.arange(out_size, dtype=np.float32)
    if align_corners:
        scale = np.float32(0.0) if out_size <= 1 else np.float32(in_size - 1) / np.float32(out_size - 1)
        src = dst * scale
    else:
        scale = np.float32(in_size) / np.float32(out_size)
        src = np.maximum((dst + np.float32(0.5)) * scale - np.float32(0.5), np.float32(0.0))
    i0 = np.clip(np.floor(src).astype(np.int64), 0, in_size - 1)
    i1 = np.minimum(i0 + 1, in_size - 1)
    frac = (src - i0.astype(np.float32)).astype(np.float32)
    w = np.zeros((out_size, in_size), dtype=np.float32)
    rows = np.arange(out_size)
    np.add.at(w, (rows, i0), np.float32(1.0) - frac)
    np.add.at(w, (rows, i1), frac)
    return w


def _vmem_limit_bytes() -> int:
    """Generation-aware scoped-VMEM limit (v7x has only 64 MiB per TensorCore)."""
    cap = 64 * 1024 * 1024  # v7x-safe fallback when hardware query is unavailable
    try:
        info = pltpu.get_tpu_info()
        cap = int(getattr(info, "vmem_capacity_bytes", cap))
    except Exception:
        pass
    # ~51 MiB on v7x (64 MiB physical), ~100 MiB on v5e/v6e (128 MiB physical).
    return max(32 * 1024 * 1024, min(int(cap * 0.8), 100 * 1024 * 1024))


def _pick_channel_block(num_channels: int, per_channel_bytes: int, budget_bytes: int,
                        max_block: int, need_two_groups: bool) -> int:
    """Largest divisor of num_channels that fits the VMEM budget (and keeps >=2 groups
    when requested, so a v7x megacore gets work even for batch == 1)."""
    limit = min(num_channels, max_block)
    if need_two_groups and num_channels > 1:
        limit = min(limit, max(1, num_channels // 2))
    best = 1
    for d in range(1, num_channels + 1):
        if num_channels % d == 0 and d <= limit and d * per_channel_bytes <= budget_bytes:
            best = d
    return best


def _rescale_kernel(wy_ref, wxt_ref, x_ref, out_ref, *, channels: int, vertical_first: bool):
    # wy_ref:  (H_out, H)            vertical interpolation weights (resident)
    # wxt_ref: (W, W_out)            horizontal weights, transposed (resident)
    # x_ref:   (1, cb, H, W)         current (batch, channel-group) image block
    # out_ref: (1, cb, H_out, W_out) channel-major result block (no padding, no relayout)
    wy = wy_ref[...]
    wxt = wxt_ref[...]
    cdt = wy.dtype  # compute dtype == weight dtype (bf16 for bf16 images, else f32)
    for c in range(channels):  # cb is a small static constant (capped by the picker)
        xc = x_ref[0, c]
        if xc.dtype != cdt:
            xc = xc.astype(cdt)
        if vertical_first:
            t = jnp.dot(wy, xc, preferred_element_type=jnp.float32)            # (H_out, W)
            oc = jnp.dot(t.astype(cdt), wxt, preferred_element_type=jnp.float32)
        else:
            t = jnp.dot(xc, wxt, preferred_element_type=jnp.float32)           # (H, W_out)
            oc = jnp.dot(wy, t.astype(cdt), preferred_element_type=jnp.float32)
        out_ref[0, c] = oc.astype(out_ref.dtype)


def rescale_pallas(img, factor, interpolation="bilinear", align_corners=True,
                   antialias=False, *, channel_block=None):
    """Pallas equivalent of kornia.geometry.transform.rescale (bilinear only)."""
    if img.ndim != 4:
        raise ValueError(f"expected NCHW input, got shape {img.shape}")
    if interpolation != "bilinear":
        # TODO(synk): 'nearest' / 'bicubic' / 'area' interpolation modes not implemented.
        raise NotImplementedError(f"interpolation={interpolation!r} not supported")
    if not jnp.issubdtype(img.dtype, jnp.floating):
        # TODO(synk): integer images would need round-to-nearest before the final cast.
        raise NotImplementedError("only floating-point images are supported")
    if isinstance(factor, (int, float)):
        fy = fx = float(factor)
    else:
        fy, fx = float(factor[0]), float(factor[1])

    B, C, H, W = img.shape
    H_out, W_out = int(H * fy), int(W * fx)
    if H_out < 1 or W_out < 1:
        raise ValueError(f"invalid output size ({H_out}, {W_out}) from factor {factor}")
    if (H_out, W_out) == (H, W):
        return img  # kornia's resize() returns the input unchanged for a no-op size
    if antialias and (H_out < H or W_out < W):
        # TODO(synk): antialias Gaussian prefilter (gaussian_blur2d) not implemented.
        raise NotImplementedError("antialias downscaling not supported")
    ac = False if align_corners is None else bool(align_corners)

    # MXU operands stay in the image's native dtype (bf16 runs the MXU at full rate);
    # accumulation is always f32 via preferred_element_type.
    compute_dtype = img.dtype if img.dtype in (jnp.bfloat16, jnp.float32) else jnp.float32
    wy = jnp.asarray(_bilinear_matrix(H, H_out, ac), dtype=compute_dtype)     # (H_out, H)
    wxt = jnp.asarray(_bilinear_matrix(W, W_out, ac).T, dtype=compute_dtype)  # (W, W_out)

    # Pass order picked at trace time by MAC count (also minimizes the intermediate).
    hfirst_macs = H * W_out * (W + H_out)
    vfirst_macs = H_out * W * (H + W_out)
    vertical_first = vfirst_macs < hfirst_macs

    # Honest VMEM accounting: BlockSpec I/O and the resident weights are double-buffered,
    # the per-channel f32 intermediate lives in compiler-managed VMEM/vregs (count 2x).
    isz = img.dtype.itemsize
    wsz = jnp.dtype(compute_dtype).itemsize
    inter_elems = (H_out * W) if vertical_first else (H * W_out)
    per_channel_bytes = 2 * (H * W + H_out * W_out) * isz + 2 * 4 * inter_elems
    weight_bytes = 2 * (H_out * H + W * W_out) * wsz
    vmem_limit = _vmem_limit_bytes()
    budget = max(per_channel_bytes, vmem_limit - weight_bytes - 2 * 1024 * 1024)

    if channel_block is not None and C % int(channel_block) == 0:
        cb = int(channel_block)
    else:
        cb = _pick_channel_block(C, per_channel_bytes, budget,
                                 max_block=16, need_two_groups=(B == 1))
    groups = C // cb

    kernel = functools.partial(_rescale_kernel, channels=cb, vertical_first=vertical_first)

    # Output is written channel-major with the exact (H_out, W_out) extent: no lane
    # padding, no wrapper-side transpose or slice copy afterwards.
    out = pl.pallas_call(
        kernel,
        out_shape=jax.ShapeDtypeStruct((B, C, H_out, W_out), img.dtype),
        grid_spec=pltpu.PrefetchScalarGridSpec(
            num_scalar_prefetch=0,
            grid=(B, groups),
            in_specs=[
                pl.BlockSpec((H_out, H), lambda b, g: (0, 0)),           # Wy (resident)
                pl.BlockSpec((W, W_out), lambda b, g: (0, 0)),           # Wx^T (resident)
                pl.BlockSpec((1, cb, H, W), lambda b, g: (b, g, 0, 0)),  # image block
            ],
            out_specs=pl.BlockSpec((1, cb, H_out, W_out), lambda b, g: (b, g, 0, 0)),
        ),
        compiler_params=pltpu.CompilerParams(
            dimension_semantics=("parallel", "parallel"),
            vmem_limit_bytes=vmem_limit,
        ),
    )(wy, wxt, img)
    return out


class Rescale:
    """JAX/Pallas mirror of kornia's Rescale nn.Module (bilinear only)."""

    def __init__(self, factor, interpolation="bilinear", align_corners=True, antialias=False):
        self.factor = factor
        self.interpolation = interpolation
        self.align_corners = align_corners
        self.antialias = antialias

    def __call__(self, x):
        return rescale_pallas(x, self.factor, self.interpolation,
                              self.align_corners, self.antialias)


def _reference_rescale(img, out_h, out_w, align_corners=True):
    """Pure-JAX gather-based bilinear reference (F.interpolate semantics)."""
    B, C, H, W = img.shape

    def src_grid(in_size, out_size):
        d = jnp.arange(out_size, dtype=jnp.float32)
        if align_corners:
            s = 0.0 if out_size <= 1 else (in_size - 1) / (out_size - 1)
            return d * s
        s = in_size / out_size
        return jnp.maximum((d + 0.5) * s - 0.5, 0.0)

    sy = src_grid(H, out_h)
    sx = src_grid(W, out_w)
    y0 = jnp.clip(jnp.floor(sy), 0, H - 1).astype(jnp.int32)
    x0 = jnp.clip(jnp.floor(sx), 0, W - 1).astype(jnp.int32)
    y1 = jnp.minimum(y0 + 1, H - 1)
    x1 = jnp.minimum(x0 + 1, W - 1)
    fy = sy - y0.astype(jnp.float32)
    fx = sx - x0.astype(jnp.float32)

    def gather(yi, xi):
        return img[:, :, yi[:, None], xi[None, :]]

    wy0, wy1 = (1.0 - fy)[:, None], fy[:, None]
    wx0, wx1 = (1.0 - fx)[None, :], fx[None, :]
    return (gather(y0, x0) * (wy0 * wx0) + gather(y0, x1) * (wy0 * wx1)
            + gather(y1, x0) * (wy1 * wx0) + gather(y1, x1) * (wy1 * wx1))


if __name__ == "__main__":
    key = jax.random.PRNGKey(0)
    B, C, H, W = 2, 4, 16, 16
    img = jax.random.normal(key, (B, C, H, W), dtype=jnp.float32)

    # Anisotropic upscale, auto channel grouping (horizontal-first order picked).
    out_up = jax.block_until_ready(Rescale((2.0, 1.5))(img))
    ref_up = _reference_rescale(img, 32, 24, align_corners=True)
    assert out_up.shape == (B, C, 32, 24) and out_up.dtype == img.dtype
    assert jnp.allclose(out_up, ref_up, atol=1e-4, rtol=1e-4)

    # Batch-of-one path: the picker caps the channel block so the grid has >= 2 steps
    # (v7x megacore); result must match the batched run.
    out_b1 = jax.block_until_ready(rescale_pallas(img[:1], (2.0, 1.5)))
    assert out_b1.shape == (1, C, 32, 24)
    assert jnp.allclose(out_b1, ref_up[:1], atol=1e-4, rtol=1e-4)

    # Isotropic downscale, forcing the channel-group grid axis (grid=(B, 2)).
    out_dn = jax.block_until_ready(rescale_pallas(img, 0.5, channel_block=2))
    ref_dn = _reference_rescale(img, 8, 8, align_corners=True)
    assert out_dn.shape == (B, C, 8, 8) and out_dn.dtype == img.dtype
    assert jnp.allclose(out_dn, ref_dn, atol=1e-4, rtol=1e-4)

    # bf16 path: native-dtype MXU operands (no f32 upcast inside the kernel).
    img_bf16 = img.astype(jnp.bfloat16)
    out_bf = jax.block_until_ready(Rescale(2.0)(img_bf16))
    ref_bf = _reference_rescale(img_bf16.astype(jnp.float32), 32, 32, align_corners=True)
    assert out_bf.shape == (B, C, 32, 32) and out_bf.dtype == jnp.bfloat16
    assert jnp.allclose(out_bf.astype(jnp.float32), ref_bf, atol=1e-1, rtol=5e-2)

    print("KERNEL_OK")
</pallas_src>

<mosaic_0001>
module attributes {stable_mosaic.version = 11 : i64} {
  func.func @_rescale_kernel(%arg0: i32, %arg1: i32, %arg2: memref<32x16xf32, #tpu.memory_space<vmem>>, %arg3: memref<16x24xf32, #tpu.memory_space<vmem>>, %arg4: memref<1x4x16x16xf32, #tpu.memory_space<vmem>>, %arg5: memref<1x4x32x24xf32, #tpu.memory_space<vmem>>) attributes {dimension_semantics = [#tpu.dimension_semantics<parallel>, #tpu.dimension_semantics<parallel>], iteration_bounds = array<i64: 2, 1>, scalar_prefetch = 0 : i64, scratch_operands = 0 : i64, tpu.core_type = #tpu.core_type<tc>, window_params = [{pipeline_mode = #tpu.pipeline_mode<synchronous>, transform_indices = @transform_0, window_bounds = array<i64: 32, 16>}, {pipeline_mode = #tpu.pipeline_mode<synchronous>, transform_indices = @transform_1, window_bounds = array<i64: 16, 24>}, {transform_indices = @transform_2, window_bounds = array<i64: 1, 4, 16, 16>}, {transform_indices = @transform_3, window_bounds = array<i64: 1, 4, 32, 24>}]} {
    %c0 = arith.constant 0 : index
    %c0_0 = arith.constant 0 : index
    %0 = vector.load %arg2[%c0, %c0_0] : memref<32x16xf32, #tpu.memory_space<vmem>>, vector<32x16xf32>
    %c0_1 = arith.constant 0 : index
    %c0_2 = arith.constant 0 : index
    %1 = vector.load %arg3[%c0_1, %c0_2] : memref<16x24xf32, #tpu.memory_space<vmem>>, vector<16x24xf32>
    %c0_3 = arith.constant 0 : index
    %c0_4 = arith.constant 0 : index
    %c0_5 = arith.constant 0 : index
    %c0_6 = arith.constant 0 : index
    %2 = vector.load %arg4[%c0_3, %c0_4, %c0_5, %c0_6] : memref<1x4x16x16xf32, #tpu.memory_space<vmem>>, vector<1x1x16x16xf32>
    %3 = vector.shape_cast %2 : vector<1x1x16x16xf32> to vector<16x16xf32>
    %cst = arith.constant dense<0.000000e+00> : vector<16x24xf32>
    %4 = tpu.matmul %3, %1, %cst {dimension_numbers = #tpu.dot_dimension_numbers<[1], [0], [0], [1], [0, 0, 1, 1], [], []>} : vector<16x16xf32>, vector<16x24xf32>, vector<16x24xf32> -> vector<16x24xf32>
    %cst_7 = arith.constant dense<0.000000e+00> : vector<32x24xf32>
    %5 = tpu.matmul %0, %4, %cst_7 {dimension_numbers = #tpu.dot_dimension_numbers<[1], [0], [0], [1], [0, 0, 1, 1], [], []>} : vector<32x16xf32>, vector<16x24xf32>, vector<32x24xf32> -> vector<32x24xf32>
    %c0_8 = arith.constant 0 : index
    %c0_9 = arith.constant 0 : index
    %c0_10 = arith.constant 0 : index
    %c0_11 = arith.constant 0 : index
    %6 = vector.load %arg5[%c0_8, %c0_9, %c0_10, %c0_11] : memref<1x4x32x24xf32, #tpu.memory_space<vmem>>, vector<1x1x32x24xf32>
    %7 = vector.shape_cast %6 : vector<1x1x32x24xf32> to vector<32x24xf32>
    %8 = vector.shape_cast %5 : vector<32x24xf32> to vector<1x1x32x24xf32>
    tpu.vector_store %arg5[%c0_8, %c0_9, %c0_10, %c0_11], %8 {strides = array<i32>} : memref<1x4x32x24xf32, #tpu.memory_space<vmem>>, vector<1x1x32x24xf32>,
    %c0_12 = arith.constant 0 : index
    %c1 = arith.constant 1 : index
    %c0_13 = arith.constant 0 : index
    %c0_14 = arith.constant 0 : index
    %9 = vector.load %arg4[%c0_12, %c1, %c0_13, %c0_14] : memref<1x4x16x16xf32, #tpu.memory_space<vmem>>, vector<1x1x16x16xf32>
    %10 = vector.shape_cast %9 : vector<1x1x16x16xf32> to vector<16x16xf32>
    %cst_15 = arith.constant dense<0.000000e+00> : vector<16x24xf32>
    %11 = tpu.matmul %10, %1, %cst_15 {dimension_numbers = #tpu.dot_dimension_numbers<[1], [0], [0], [1], [0, 0, 1, 1], [], []>} : vector<16x16xf32>, vector<16x24xf32>, vector<16x24xf32> -> vector<16x24xf32>
    %cst_16 = arith.constant dense<0.000000e+00> : vector<32x24xf32>
    %12 = tpu.matmul %0, %11, %cst_16 {dimension_numbers = #tpu.dot_dimension_numbers<[1], [0], [0], [1], [0, 0, 1, 1], [], []>} : vector<32x16xf32>, vector<16x24xf32>, vector<32x24xf32> -> vector<32x24xf32>
    %c0_17 = arith.constant 0 : index
    %c1_18 = arith.constant 1 : index
    %c0_19 = arith.constant 0 : index
    %c0_20 = arith.constant 0 : index
    %13 = vector.load %arg5[%c0_17, %c1_18, %c0_19, %c0_20] : memref<1x4x32x24xf32, #tpu.memory_space<vmem>>, vector<1x1x32x24xf32>
    %14 = vector.shape_cast %13 : vector<1x1x32x24xf32> to vector<32x24xf32>
    %15 = vector.shape_cast %12 : vector<32x24xf32> to vector<1x1x32x24xf32>
    tpu.vector_store %arg5[%c0_17, %c1_18, %c0_19, %c0_20], %15 {strides = array<i32>} : memref<1x4x32x24xf32, #tpu.memory_space<vmem>>, vector<1x1x32x24xf32>,
    %c0_21 = arith.constant 0 : index
    %c2 = arith.constant 2 : index
    %c0_22 = arith.constant 0 : index
    %c0_23 = arith.constant 0 : index
    %16 = vector.load %arg4[%c0_21, %c2, %c0_22, %c0_23] : memref<1x4x16x16xf32, #tpu.memory_space<vmem>>, vector<1x1x16x16xf32>
    %17 = vector.shape_cast %16 : vector<1x1x16x16xf32> to vector<16x16xf32>
    %cst_24 = arith.constant dense<0.000000e+00> : vector<16x24xf32>
    %18 = tpu.matmul %17, %1, %cst_24 {dimension_numbers = #tpu.dot_dimension_numbers<[1], [0], [0], [1], [0, 0, 1, 1], [], []>} : vector<16x16xf32>, vector<16x24xf32>, vector<16x24xf32> -> vector<16x24xf32>
    %cst_25 = arith.constant dense<0.000000e+00> : vector<32x24xf32>
    %19 = tpu.matmul %0, %18, %cst_25 {dimension_numbers = #tpu.dot_dimension_numbers<[1], [0], [0], [1], [0, 0, 1, 1], [], []>} : vector<32x16xf32>, vector<16x24xf32>, vector<32x24xf32> -> vector<32x24xf32>
    %c0_26 = arith.constant 0 : index
    %c2_27 = arith.constant 2 : index
    %c0_28 = arith.constant 0 : index
    %c0_29 = arith.constant 0 : index
    %20 = vector.load %arg5[%c0_26, %c2_27, %c0_28, %c0_29] : memref<1x4x32x24xf32, #tpu.memory_space<vmem>>, vector<1x1x32x24xf32>
    %21 = vector.shape_cast %20 : vector<1x1x32x24xf32> to vector<32x24xf32>
    %22 = vector.shape_cast %19 : vector<32x24xf32> to vector<1x1x32x24xf32>
    tpu.vector_store %arg5[%c0_26, %c2_27, %c0_28, %c0_29], %22 {strides = array<i32>} : memref<1x4x32x24xf32, #tpu.memory_space<vmem>>, vector<1x1x32x24xf32>,
    %c0_30 = arith.constant 0 : index
    %c3 = arith.constant 3 : index
    %c0_31 = arith.constant 0 : index
    %c0_32 = arith.constant 0 : index
    %23 = vector.load %arg4[%c0_30, %c3, %c0_31, %c0_32] : memref<1x4x16x16xf32, #tpu.memory_space<vmem>>, vector<1x1x16x16xf32>
    %24 = vector.shape_cast %23 : vector<1x1x16x16xf32> to vector<16x16xf32>
    %cst_33 = arith.constant dense<0.000000e+00> : vector<16x24xf32>
    %25 = tpu.matmul %24, %1, %cst_33 {dimension_numbers = #tpu.dot_dimension_numbers<[1], [0], [0], [1], [0, 0, 1, 1], [], []>} : vector<16x16xf32>, vector<16x24xf32>, vector<16x24xf32> -> vector<16x24xf32>
    %cst_34 = arith.constant dense<0.000000e+00> : vector<32x24xf32>
    %26 = tpu.matmul %0, %25, %cst_34 {dimension_numbers = #tpu.dot_dimension_numbers<[1], [0], [0], [1], [0, 0, 1, 1], [], []>} : vector<32x16xf32>, vector<16x24xf32>, vector<32x24xf32> -> vector<32x24xf32>
    %c0_35 = arith.constant 0 : index
    %c3_36 = arith.constant 3 : index
    %c0_37 = arith.constant 0 : index
    %c0_38 = arith.constant 0 : index
    %27 = vector.load %arg5[%c0_35, %c3_36, %c0_37, %c0_38] : memref<1x4x32x24xf32, #tpu.memory_space<vmem>>, vector<1x1x32x24xf32>
    %28 = vector.shape_cast %27 : vector<1x1x32x24xf32> to vector<32x24xf32>
    %29 = vector.shape_cast %26 : vector<32x24xf32> to vector<1x1x32x24xf32>
    tpu.vector_store %arg5[%c0_35, %c3_36, %c0_37, %c0_38], %29 {strides = array<i32>} : memref<1x4x32x24xf32, #tpu.memory_space<vmem>>, vector<1x1x32x24xf32>,
    return
  }
  func.func @transform_0(%arg0: i32, %arg1: i32) -> (i32, i32) {
    %c0_i32 = arith.constant 0 : i32
    %c0_i32_0 = arith.constant 0 : i32
    %c0_i32_1 = arith.constant 0 : i32
    return %c0_i32, %c0_i32_0 : i32, i32
  }
  func.func @transform_1(%arg0: i32, %arg1: i32) -> (i32, i32) {
    %c0_i32 = arith.constant 0 : i32
    %c0_i32_0 = arith.constant 0 : i32
    %c0_i32_1 = arith.constant 0 : i32
    return %c0_i32, %c0_i32_0 : i32, i32
  }
  func.func @transform_2(%arg0: i32, %arg1: i32) -> (i32, i32, i32, i32) {
    %c0_i32 = arith.constant 0 : i32
    %c0_i32_0 = arith.constant 0 : i32
    %c0_i32_1 = arith.constant 0 : i32
    return %arg0, %arg1, %c0_i32, %c0_i32_0 : i32, i32, i32, i32
  }
  func.func @transform_3(%arg0: i32, %arg1: i32) -> (i32, i32, i32, i32) {
    %c0_i32 = arith.constant 0 : i32
    %c0_i32_0 = arith.constant 0 : i32
    %c0_i32_1 = arith.constant 0 : i32
    return %arg0, %arg1, %c0_i32, %c0_i32_0 : i32, i32, i32, i32
  }
}

</mosaic_0001>

<bundles_post_ra>
// kernel: tpu_custom_call.1
= control target key start
LH: loop header
LB: loop body
LE: loop exit
PB: predicated region body
PF: predicated region fallthrough
CT: control target
= control target key end

     0   :  { %8 = vsyncpa [#allocation3], 0  ;;  %s1606_s0 = inlined_call_operand.vmem [shape: f32[32,16], index: 0, kind: input, shape index: {}]   ;;  %s1607_s1 = inlined_call_operand.vmem [shape: f32[16,24], index: 1, kind: input, shape index: {}]   ;;  %s1608_s2 = inlined_call_operand.hbm [shape: f32[2,4,16,16], index: 2, kind: input, shape index: {}]   ;;  %s1609_s3 = inlined_call_operand.vmem [shape: f32[2,4,32,24], index: 3, kind: output, shape index: {}]  }
   0x1   :  { %10 = vsyncpa [#allocation3 + $0x1], 0  ;;  %s1396_s12 = smov 0   ;;  %s1398_s13 = smov 0  }
   0x2   :  { %s1400_s14 = smov 0   ;;  %s1402_s15 = smov 0  }
   0x3   :  { %s1404_s16 = smov 0   ;;  %s1406_s17 = smov 0  }
   0x4 LB: > { %s1037_s18 = sadd.s32 4294967295, %s1371_s17   ;;  %s28_s19 = sadd.s32 1, %s1367_s16  ;;  %s1371_s17 = sphi %s1406_s17, %s16_s17   ;;  %s1367_s16 = sphi %s1404_s16, %s1617_s16   ;;  %s1363_s15 = sphi %s1402_s15, %s1616_s15   ;;  %s1359_s14 = sphi %s1400_s14, %s1615_s14   ;;  %s1355_s13 = sphi %s1398_s13, %s1614_s13   ;;  %s1351_s12 = sphi %s1396_s12, %s1613_s12  }
   0x5   : > { %p30_p0 = scmp.ge.s32.totalorder %s28_s19, 2  ;;  %s79_s20 = sadd.s32 1, %s1359_s14 }
   0x6   : > { %p86_p1 = scmp.ne.s32.totalorder %s1359_s14, %s1355_s13  ;;  %p87_p2 = scmp.eq.s32.totalorder %s1371_s17, 0 }
   0x7   : > { %s1619_s19 = smov (%p30_p0, %s28_s19), 0  ;;  %p92_p4 = scmp.ne.s32.totalorder %s1355_s13, %s1351_s12 }
   0x8   : > { %p1432_p3 = por %p87_p2, %p86_p1  ;;  %s74_s22 = ssub.s32 %s1367_s16, %s1619_s19 }
   0x9   : > { %p93_p5 = scmp.eq.s32.totalorder %s1037_s18, 0  ;;  %p77_p6 = scmp.eq.s32.totalorder %s74_s22, 0 }
   0xa   : > { %p1240_p8 = scmp.lt.s32.totalorder %s1371_s17, 2  ;;  %s150_s25 = sand.u32 1, %s1359_s14  }
   0xb   : > { %p1439_p7 = por %p93_p5, %p92_p4  ;;  %s1092_s26 = sshll.u32 %s1367_s16, 10 }
   0xc   : > { %s1445_s24 = scalar_select %p77_p6, %s1359_s14, %s79_s20  }
   0xd   : > { %s1041_s27 = sshll.u32 %s150_s25, 6  ;;  %s1452_s30 = scalar_lea.hbm %s1608_s2, %s1092_s26 }
   0xe   : > { %s154_s4 = scalar_lea.vmem [#allocation2], %s1041_s27  ;;  %p1456_p9 = pnand %p1240_p8, %p1432_p3 }
   0xf   : > { %s164_s5 = sshll.u32 %s154_s4, 4  ;;  %s1462_s7 = scalar_lea.sflag [#allocation3], %s150_s25  ;;  %s1460_s5 = int_to_ptr.vmem [resolvable:$true] %s164_s5 }
  0x10   : > { %s1291_s8 = scalar_lea.hbm %s1452_s30, 1024  ;;  %p1293_p11 = pneg %p1456_p9 }
  0x11   : > { %p1292_p10 = scmp.ne.s32.totalorder %s1452_s30, %s1291_s8  ;;  %s1296_s11 = scalar_lea.hbm %s1608_s2, 2048 }
  0x12   : > { %p1297_p0 = scmp.lt.u32.totalorder %s1452_s30, %s1608_s2  ;;  %p1298_p1 = scmp.lt.u32.totalorder %s1296_s11, %s1291_s8 }
  0x13   : > { %p1294_p12 = pnand %p1293_p11, %p1292_p10  ;;  %p1300_p3 = scmp.lt.u32.totalorder %s1291_s8, %s1452_s30 }
  0x14   : > { %p1299_p2 = por %p1298_p1, %p1297_p0 }
  0x15   : > { %p1295_p13 = pneg %p1294_p12 }
  0x16   : > { %p1301_p4 = por %p1300_p3, %p1299_p2 }
  0x18   : > { %p1302_p5 = pnand %p1301_p4, %p1295_p13 }
  0x1a   : > { %1305 = shalt.err (!%p1302_p5)
}
  0x1b   : > { %s1306_s20 = scalar_lea.vmem %s1460_s5, 1024  ;;  %s1373_s21 = smov [#allocation2]  }
  0x1c   : > { %p1307_p6 = scmp.ne.s32.totalorder %s1460_s5, %s1306_s20  ;;  %s1311_s22 = sshll.u32 %s1373_s21, 4  ;;  %s1312_s22 = int_to_ptr.vmem [resolvable:$false] %s1311_s22 }
  0x1d   : > { %s1313_s25 = scalar_lea.vmem %s1312_s22, 2048  ;;  %p1314_p12 = scmp.lt.s32.totalorder %s1460_s5, %s1312_s22 }
  0x1e   : > { %p1309_p8 = pnand %p1307_p6, %p1293_p11  ;;  %p1315_p0 = scmp.lt.s32.totalorder %s1313_s25, %s1306_s20 }
  0x20   : > { %p1310_p10 = pneg %p1309_p8  ;;  %p1316_p1 = por %p1315_p0, %p1314_p12 }
  0x22   : > { %p1317_p2 = pnand %p1316_p1, %p1310_p10 }
  0x24   : > { %1320 = shalt.err (!%p1317_p2)
}
  0x25   : > { %s1374_s26 = smov 128   ;;  %s1375_s27 = smov 8  }
  0x26   : > { %1239 = dma.hbm_to_vmem [thread:$0]  (!%p1456_p9), %s1452_s30, 1024, %s1460_s5, %s1462_s7, %s1374_s26, %s1374_s26, %s1375_s27  }
  0x27   : > { %p1044_p11 = scmp.ge.s32.totalorder %s1371_s17, 1  ;;  %p172_p13 = scmp.lt.s32.totalorder %s1371_s17, 3 }
  0x29   : > { %p173_p3 = pnand %p1044_p11, %p172_p13 }
  0x2a   : > { %s178_s28 = sand.u32 (!%p173_p3), 1, %s1355_s13  }
  0x2b   : > { %176 = sbr.rel (%p173_p3) target bundleno = 722 (0x2d2), region = 32  ;;  %s1045_s29 = sshll.u32 (!%p173_p3), %s178_s28, 6 }
  0x2c   : > { %s179_s4 = scalar_lea.sflag (!%p173_p3), [#allocation3], %s178_s28  ;;  %s1493_s8 = scalar_lea.vmem (!%p173_p3), [#allocation2], %s1045_s29 }
  0x32   : > { %1346 = dma.done.wait (%p1439_p7), %s179_s4, 1024  }
  0x33   : > { %1348 = vsyncadd (%p1439_p7), %s179_s4, 4294966272  ;;  %vm230_vm0 = vcmask 130048   ;;  %v226_v0 = vld [vmem:[%s1607_s1] sm:$0xff]  ;;  %v227_v1 = vld [vmem:[%s1607_s1 + $0x8] sm:$0xff]  ;;  %p212_p7 = scmp.lt.s32.totalorder %s1363_s15, 1  ;;  %vm409_vm1 = vcmask 195584  }
  0x34   : > { %v228_v2 = vld [vmem:[%s1493_s8] sm:$0xff]  ;;  %v1202_v3 = vpack.c.bf16 %v227_v1, %v226_v0  ;;  %v1054_v4 = vld [vmem:[%s1493_s8 + $0x10] sm:$0xff]  ;;  %v229_v5 = vld [vmem:[%s1493_s8 + $0x8] sm:$0xff] }
  0x35   : > { %1138 = vmatprep.mubr.msk.f32.mxu1 %vm230_vm0, %v228_v2  ;;  %1155 = vmatprep.mubr.msk.f32.mxu0 %vm230_vm0, %v1054_v4  ;;  %v1055_v6 = vld [vmem:[%s1493_s8 + $0x18] sm:$0xff]  ;;  %v222_v7 = vld [vmem:[%s1606_s0] sm:$0xff]  ;;  %v223_v14 = vld [vmem:[%s1606_s0 + $0x8] sm:$0xff]  ;;  %s1621_s15 = smov (!%p212_p7, %s1363_s15), 1 }
  0x36   : > { %1203 = vmatprep.subr.bf16.mxu1 %v1202_v3  ;;  %1211 = vmatprep.subr.bf16.mxu0 %v1202_v3  ;;  %v224_v15 = vld [vmem:[%s1606_s0 + $0x10] sm:$0xff]  ;;  %v225_v16 = vld [vmem:[%s1606_s0 + $0x18] sm:$0xff]  ;;  %v1066_v17 = vld [vmem:[%s1493_s8 + $0x20] sm:$0xff]  ;;  %s1093_s22 = sshll.u32 %s1621_s15, 7 }
  0x37   : > { %1205 = vmatpush3.bf16.msra.mxu1 %v1202_v3  ;;  %1213 = vmatpush3.bf16.msra.mxu0 %v1202_v3  ;;  %v1078_v18 = vld [vmem:[%s1493_s8 + $0x30] sm:$0xff]  ;;  %v1067_v19 = vld [vmem:[%s1493_s8 + $0x28] sm:$0xff]  ;;  %v1079_v20 = vld [vmem:[%s1493_s8 + $0x38] sm:$0xff]  ;;  %s1548_s27 = scalar_lea.vmem %s1609_s3, %s1093_s22 }
  0x3a   : > { %1139 = vmatmul.mubr.msk.f32.vlgmr.msra.gmra.mrb[0].mxu1 %vm230_vm0, %v229_v5  ;;  %1156 = vmatmul.mubr.msk.f32.vlgmr.msra.gmra.mrb[0].mxu0 %vm230_vm0, %v1055_v6 }
  0x3b   : > { %1145 = vmatprep.mubr.msk.f32.mxu1 %vm230_vm0, %v222_v7  ;;  %1162 = vmatprep.mubr.msk.f32.mxu0 %vm230_vm0, %v222_v7 }
 0x10d   : > { %v1140_v8 = vpop.f32.mrb[0].mxu1  ;;  %v1157_v9 = vpop.f32.mrb[0].mxu0 }
 0x10e   : > { %v303_v10 = vpop.f32.mrb[1].mxu1  ;;  %v489_v11 = vpop.f32.mrb[1].mxu0 }
 0x10f   : > { %v1206_v12 = vpack.c.bf16 %v1140_v8, %v303_v10  ;;  %v1214_v13 = vpack.c.bf16 %v1157_v9, %v489_v11 }
 0x111   : > { %1207 = vmatprep.subr.bf16.mxu1 %v1206_v12  ;;  %1215 = vmatprep.subr.bf16.mxu0 %v1214_v13 }
 0x112   : > { %1209 = vmatpush3.bf16.msra.mxu1 %v1206_v12  ;;  %1217 = vmatpush3.bf16.msra.mxu0 %v1214_v13 }
 0x113   : > { %1219 = vmatprep.subr.bf16.mxu1 %v1202_v3  ;;  %1227 = vmatprep.subr.bf16.mxu0 %v1202_v3 }
 0x115   : > { %1146 = vmatmul.mubr.msk.f32.vlgmr.msra.gmra.mrb[2].mxu1 %vm230_vm0, %v223_v14  ;;  %1163 = vmatmul.mubr.msk.f32.vlgmr.msra.gmra.mrb[2].mxu0 %vm230_vm0, %v223_v14 }
 0x116   : > { %1221 = vmatpush3.bf16.msra.mxu1 %v1202_v3  ;;  %1229 = vmatpush3.bf16.msra.mxu0 %v1202_v3 }
 0x117   : > { %1148 = vmatprep.mubr.msk.f32.mxu1 %vm230_vm0, %v224_v15  ;;  %1165 = vmatprep.mubr.msk.f32.mxu0 %vm230_vm0, %v224_v15 }
 0x119   : > { %1149 = vmatmul.mubr.msk.f32.gmra.mrb[4].mxu1 %vm230_vm0, %v225_v16  ;;  %1166 = vmatmul.mubr.msk.f32.gmra.mrb[4].mxu0 %vm230_vm0, %v225_v16 }
 0x11a   : > { %1172 = vmatprep.mubr.msk.f32.mxu1 %vm230_vm0, %v1066_v17  ;;  %1189 = vmatprep.mubr.msk.f32.mxu0 %vm230_vm0, %v1078_v18 }
 0x11d   : > { %1173 = vmatmul.mubr.msk.f32.vlgmr.msra.gmra.mrb[6].mxu1 %vm230_vm0, %v1067_v19  ;;  %1190 = vmatmul.mubr.msk.f32.vlgmr.msra.gmra.mrb[6].mxu0 %vm230_vm0, %v1079_v20 }
 0x11e   : > { %1179 = vmatprep.mubr.msk.f32.mxu1 %vm230_vm0, %v222_v7  ;;  %1196 = vmatprep.mubr.msk.f32.mxu0 %vm230_vm0, %v222_v7 }
 0x1e8   : > { %v1147_v21 = vpop.f32.mrb[2].mxu1  ;;  %v1164_v22 = vpop.f32.mrb[2].mxu0 }
 0x1e9   : > { %411 = vst.msk [vmem:[%s1548_s27 + $0x8] sm:$0xff] %vm409_vm1, %v1147_v21  ;;  %1063 = vst.msk [vmem:[%s1548_s27 + $0x28] sm:$0xff] %vm409_vm1, %v1164_v22  ;;  %v390_v23 = vpop.f32.mrb[3].mxu1  ;;  %v564_v24 = vpop.f32.mrb[3].mxu0 }
 0x1ea   : > { %410 = vst.msk [vmem:[%s1548_s27] sm:$0xff] %vm409_vm1, %v390_v23  ;;  %1062 = vst.msk [vmem:[%s1548_s27 + $0x20] sm:$0xff] %vm409_vm1, %v564_v24 }
 0x1ec   : > { %v1150_v25 = vpop.f32.mrb[4].mxu1  ;;  %v1167_v26 = vpop.f32.mrb[4].mxu0 }
 0x1ed   : > { %413 = vst.msk [vmem:[%s1548_s27 + $0x18] sm:$0xff] %vm409_vm1, %v1150_v25  ;;  %1065 = vst.msk [vmem:[%s1548_s27 + $0x38] sm:$0xff] %vm409_vm1, %v1167_v26  ;;  %v400_v27 = vpop.f32.mrb[5].mxu1  ;;  %v574_v28 = vpop.f32.mrb[5].mxu0 }
 0x1ee   : > { %412 = vst.msk [vmem:[%s1548_s27 + $0x10] sm:$0xff] %vm409_vm1, %v400_v27  ;;  %1064 = vst.msk [vmem:[%s1548_s27 + $0x30] sm:$0xff] %vm409_vm1, %v574_v28 }
 0x1f0   : > { %v1174_v29 = vpop.f32.mrb[6].mxu1  ;;  %v1191_v30 = vpop.f32.mrb[6].mxu0 }
 0x1f1   : > { %v663_v31 = vpop.f32.mrb[7].mxu1  ;;  %v837_v32 = vpop.f32.mrb[7].mxu0 }
 0x1f2   : > { %v1222_v33 = vpack.c.bf16 %v1174_v29, %v663_v31  ;;  %v1230_v34 = vpack.c.bf16 %v1191_v30, %v837_v32 }
 0x1f4   : > { %1223 = vmatprep.subr.bf16.mxu1 %v1222_v33  ;;  %1231 = vmatprep.subr.bf16.mxu0 %v1230_v34 }
 0x1f5   : > { %1225 = vmatpush3.bf16.msra.mxu1 %v1222_v33  ;;  %1233 = vmatpush3.bf16.msra.mxu0 %v1230_v34 }
 0x1f8   : > { %1180 = vmatmul.mubr.msk.f32.vlgmr.msra.gmra.mrb[8].mxu1 %vm230_vm0, %v223_v14  ;;  %1197 = vmatmul.mubr.msk.f32.vlgmr.msra.gmra.mrb[8].mxu0 %vm230_vm0, %v223_v14 }
 0x1f9   : > { %1182 = vmatprep.mubr.msk.f32.mxu1 %vm230_vm0, %v224_v15  ;;  %1199 = vmatprep.mubr.msk.f32.mxu0 %vm230_vm0, %v224_v15 }
 0x1fc   : > { %1183 = vmatmul.mubr.msk.f32.gmra.mrb[10].mxu1 %vm230_vm0, %v225_v16  ;;  %1200 = vmatmul.mubr.msk.f32.gmra.mrb[10].mxu0 %vm230_vm0, %v225_v16 }
 0x2cb   : > { %v1181_v35 = vpop.f32.mrb[8].mxu1  ;;  %v1198_v36 = vpop.f32.mrb[8].mxu0 }
 0x2cc   : > { %1075 = vst.msk [vmem:[%s1548_s27 + $0x48] sm:$0xff] %vm409_vm1, %v1181_v35  ;;  %1087 = vst.msk [vmem:[%s1548_s27 + $0x68] sm:$0xff] %vm409_vm1, %v1198_v36  ;;  %v738_v37 = vpop.f32.mrb[9].mxu1  ;;  %v912_v38 = vpop.f32.mrb[9].mxu0 }
 0x2cd   : > { %1074 = vst.msk [vmem:[%s1548_s27 + $0x40] sm:$0xff] %vm409_vm1, %v738_v37  ;;  %1086 = vst.msk [vmem:[%s1548_s27 + $0x60] sm:$0xff] %vm409_vm1, %v912_v38 }
 0x2cf   : > { %v1184_v39 = vpop.f32.mrb[10].mxu1  ;;  %v1201_v40 = vpop.f32.mrb[10].mxu0 }
 0x2d0   : > { %1077 = vst.msk [vmem:[%s1548_s27 + $0x58] sm:$0xff] %vm409_vm1, %v1184_v39  ;;  %1089 = vst.msk [vmem:[%s1548_s27 + $0x78] sm:$0xff] %vm409_vm1, %v1201_v40  ;;  %v748_v41 = vpop.f32.mrb[11].mxu1  ;;  %v922_v42 = vpop.f32.mrb[11].mxu0 }
 0x2d1   : > { %1076 = vst.msk [vmem:[%s1548_s27 + $0x50] sm:$0xff] %vm409_vm1, %v748_v41  ;;  %1088 = vst.msk [vmem:[%s1548_s27 + $0x70] sm:$0xff] %vm409_vm1, %v922_v42 }
 0x2d2 PF: > { %s16_s17 = sadd.s32 1, %s1371_s17   ;;  %s1613_s12 = smov %s1355_s13 }
 0x2d3   : > { %p13_p9 = scmp.ge.s32.totalorder %s16_s17, 4   ;;  %s1614_s13 = smov %s1359_s14 }
 0x2d4   : > { %s1615_s14 = smov %s1445_s24  ;;  %s1616_s15 = smov %s1367_s16 }
 0x2d5   : > { %s1617_s16 = smov %s1619_s19  ;;  %15 = sbr.rel (!%p13_p9) target bundleno = 4 (0x4), region = 78 }
 0x2dc   :  { %968 = vsyncpa [#allocation3], 1 }
 0x2dd   :  { %970 = vsyncpa [#allocation3 + $0x1], 1 }

</bundles_post_ra>
